<compile_context>
chip_gen: v5e
topology: v5e:2x2
jax: 0.10.0
libtpu: 0.0.40
codegen_flags: <defaults>
</compile_context>

<pallas_src>
import functools

import jax
import jax.numpy as jnp
from jax.experimental import pallas as pl
from jax.experimental.pallas import tpu as pltpu


def _round_up(a, b):
    return (a + b - 1) // b * b


# ---------------------------------------------------------------------------
# Kernel 1: InputNorm forward (inference path).
# ---------------------------------------------------------------------------
def _input_norm_kernel(count_ref, mean_ref, sqsum_ref, x_ref, o_ref, *, cliprange):
    count = count_ref[0]                               # f32 scalar (SMEM prefetch)
    x = x_ref[...].astype(jnp.float32)                 # (tr, L) cast in-kernel

    # scale/bias folding: one (1, L) rsqrt per tile (EUP), no per-element divide
    # and no full-tile select.
    denom = jnp.maximum(count - 1.0, 1.0)              # guard count <= 1
    var = sqsum_ref[...] / denom                       # (1, L)
    inv_sd = jax.lax.rsqrt(var)
    inv_sd = jnp.where(var != 0.0, inv_sd, 1.0)        # stddev()==0 -> 1
    use_norm = count > 1.0                             # matches `if self.count > 1`
    scale = jnp.where(use_norm, inv_sd, 1.0)           # (1, L)
    shift = jnp.where(use_norm, mean_ref[...], 0.0)    # (1, L)

    y = (x - shift) * scale
    o_ref[...] = jnp.clip(y, -cliprange, cliprange).astype(o_ref.dtype)


def input_norm_forward(x, mean, squares_sum, count, cliprange=5.0, block_rows=512):
    """InputNorm.forward (eval mode). x: (..., F), any float dtype; returns f32."""
    orig_shape = x.shape
    F = orig_shape[-1]
    x2 = x.reshape(-1, F)                 # keep native dtype (no wrapper astype)
    R = x2.shape[0]

    # Lane-dense packing: fold 128 // F logical rows into one 128-lane row.
    if F < 128 and 128 % F == 0:
        lane_factor = 128 // F
    else:
        lane_factor = 1
    L = F * lane_factor

    mean_l = jnp.tile(mean.astype(jnp.float32).reshape(1, F), (1, lane_factor))
    sqsum_l = jnp.tile(squares_sum.astype(jnp.float32).reshape(1, F), (1, lane_factor))

    # Big tiles + cdiv/padding instead of a divisibility assert.
    packed_rows = pl.cdiv(R, lane_factor)
    tr = _round_up(min(block_rows, _round_up(packed_rows, 8)), 8)
    padded_packed = _round_up(packed_rows, tr)
    R_pad = padded_packed * lane_factor
    if R_pad != R:
        x2 = jnp.pad(x2, ((0, R_pad - R), (0, 0)))
    xp = x2.reshape(padded_packed, L)

    count_arr = jnp.asarray([count], dtype=jnp.float32)     # scalar prefetch (SMEM)
    kernel = functools.partial(_input_norm_kernel, cliprange=float(cliprange))

    in_bytes = int(padded_packed) * int(L) * int(x2.dtype.itemsize)
    out_bytes = int(padded_packed) * int(L) * 4

    out = pl.pallas_call(
        kernel,
        out_shape=jax.ShapeDtypeStruct((padded_packed, L), jnp.float32),
        grid_spec=pltpu.PrefetchScalarGridSpec(
            num_scalar_prefetch=1,                            # count -> SMEM
            grid=(padded_packed // tr,),
            in_specs=[
                pl.BlockSpec((1, L), lambda i, cnt: (0, 0)),   # mean (resident)
                pl.BlockSpec((1, L), lambda i, cnt: (0, 0)),   # squares_sum
                pl.BlockSpec((tr, L), lambda i, cnt: (i, 0)),  # x rows
            ],
            out_specs=pl.BlockSpec((tr, L), lambda i, cnt: (i, 0)),
        ),
        compiler_params=pltpu.CompilerParams(
            # "parallel" lets v7x shard the row axis across both TensorCores.
            dimension_semantics=("parallel",),
            # Explicit scoped-VMEM budget (v5e default is only 16 MiB); tiles are
            # small enough (tr*L*4B ~ 256 KiB) to also fit v7x's 64 MiB VMEM.
            vmem_limit_bytes=32 * 1024 * 1024,
        ),
        # Advisory: this call is memory-bound.
        cost_estimate=pl.CostEstimate(
            flops=3 * int(padded_packed) * int(L),
            transcendentals=int(L),
            bytes_accessed=in_bytes + out_bytes + 2 * int(L) * 4,
        ),
    )(count_arr, mean_l, sqsum_l, xp)

    out = out.reshape(R_pad, F)[:R]
    return out.reshape(orig_shape)


# ---------------------------------------------------------------------------
# Kernel 2: ItemBlock tail = InputEmbedding (Linear+ReLU+LayerNorm) +
#           FFResblock + final masking, fused per row tile.
# ---------------------------------------------------------------------------
def _layer_norm(y, w, b, eps=1e-5):
    mu = jnp.mean(y, axis=-1, keepdims=True)
    yc = y - mu
    var = jnp.mean(yc * yc, axis=-1, keepdims=True)
    return yc * jax.lax.rsqrt(var + eps) * w + b


def _item_tail_kernel(xn_ref, keep_ref, we_ref, be_ref, ln1w_ref, ln1b_ref,
                      w1_ref, b1_ref, w2_ref, b2_ref, ln2w_ref, ln2b_ref, o_ref):
    xn = xn_ref[...]                                               # (tr, d_in) f32
    # InputEmbedding: relu(Linear) -> LayerNorm
    h = jnp.dot(xn, we_ref[...], preferred_element_type=jnp.float32) + be_ref[...]
    h = jnp.maximum(h, 0.0)
    h = _layer_norm(h, ln1w_ref[...], ln1b_ref[...])
    # FFResblock: x + relu(linear_2(relu(linear_1(x)))) -> LayerNorm
    f = jnp.dot(h, w1_ref[...], preferred_element_type=jnp.float32) + b1_ref[...]
    f = jnp.maximum(f, 0.0)
    r = jnp.dot(f, w2_ref[...], preferred_element_type=jnp.float32) + b2_ref[...]
    r = jnp.maximum(r, 0.0)
    h = _layer_norm(h + r, ln2w_ref[...], ln2b_ref[...])
    # x * (~mask)
    o_ref[...] = (h * keep_ref[...]).astype(o_ref.dtype)


def item_block_tail(xn, keep, params, block_rows=256):
    R, d_in = xn.shape
    d_model = params["w_emb"].shape[1]
    tr = _round_up(min(block_rows, _round_up(R, 8)), 8)
    R_pad = _round_up(R, tr)
    if R_pad != R:
        xn = jnp.pad(xn, ((0, R_pad - R), (0, 0)))
        keep = jnp.pad(keep, ((0, R_pad - R), (0, 0)))

    w_names = ("w_emb", "b_emb", "ln1_w", "ln1_b",
               "w_ff1", "b_ff1", "w_ff2", "b_ff2", "ln2_w", "ln2_b")
    weights = [params[n] for n in w_names]
    weight_specs = [pl.BlockSpec(tuple(w.shape), lambda i: (0, 0)) for w in weights]

    out = pl.pallas_call(
        _item_tail_kernel,
        out_shape=jax.ShapeDtypeStruct((R_pad, d_model), jnp.float32),
        grid_spec=pltpu.PrefetchScalarGridSpec(
            num_scalar_prefetch=0,
            grid=(R_pad // tr,),
            in_specs=[pl.BlockSpec((tr, d_in), lambda i: (i, 0)),   # normalized x
                      pl.BlockSpec((tr, 1), lambda i: (i, 0))]      # keep mask (f32)
                     + weight_specs,                                # resident weights
            out_specs=pl.BlockSpec((tr, d_model), lambda i: (i, 0)),
        ),
        compiler_params=pltpu.CompilerParams(
            dimension_semantics=("parallel",),
            vmem_limit_bytes=32 * 1024 * 1024,
        ),
    )(xn, keep, *weights)
    return out[:R]


def item_block_forward(x, norm_state, params, mask_feature=0, cliprange=5.0):
    """ItemBlock.forward with origin=None (no relpos / topk path)."""
    B, items, F = x.shape
    mask = x[:, :, mask_feature] == 0                     # True = empty item slot
    xn = input_norm_forward(x, norm_state["mean"], norm_state["squares_sum"],
                            norm_state["count"], cliprange=cliprange)
    keep = jnp.logical_not(mask).reshape(-1, 1).astype(jnp.float32)
    y = item_block_tail(xn.reshape(-1, F), keep, params)
    return y.reshape(B, items, -1), None, mask


# ---------------------------------------------------------------------------
# Pure-JAX references.
# ---------------------------------------------------------------------------
def _reference_input_norm(x, mean, squares_sum, count, cliprange=5.0):
    x = x.astype(jnp.float32)
    if count > 1:
        sd = jnp.sqrt(squares_sum / (count - 1))
        sd = jnp.where(sd == 0.0, 1.0, sd)
        x = (x - mean) / sd
    return jnp.clip(x, -cliprange, cliprange)


def _reference_layer_norm(y, w, b, eps=1e-5):
    mu = jnp.mean(y, axis=-1, keepdims=True)
    var = jnp.mean((y - mu) ** 2, axis=-1, keepdims=True)
    return (y - mu) / jnp.sqrt(var + eps) * w + b


def _reference_item_block(x, norm_state, params, mask_feature=0, cliprange=5.0):
    B, items, F = x.shape
    mask = x[:, :, mask_feature] == 0
    xn = _reference_input_norm(x, norm_state["mean"], norm_state["squares_sum"],
                               norm_state["count"], cliprange).reshape(-1, F)
    h = jnp.maximum(xn @ params["w_emb"] + params["b_emb"], 0.0)
    h = _reference_layer_norm(h, params["ln1_w"], params["ln1_b"])
    f = jnp.maximum(h @ params["w_ff1"] + params["b_ff1"], 0.0)
    r = jnp.maximum(f @ params["w_ff2"] + params["b_ff2"], 0.0)
    h = _reference_layer_norm(h + r, params["ln2_w"], params["ln2_b"])
    h = h * jnp.logical_not(mask).reshape(-1, 1).astype(jnp.float32)
    return h.reshape(B, items, -1), None, mask


def _linear_init(k, fan_in, shape):
    bound = 1.0 / (fan_in ** 0.5)
    return jax.random.uniform(k, shape, jnp.float32, -bound, bound)


if __name__ == "__main__":
    key = jax.random.PRNGKey(0)
    ks = jax.random.split(key, 9)

    # (batch, items, features); relpos=False so d_in == features at forward time.
    B, items, d_in = 2, 8, 32
    d_model, d_ff = 64, 128
    mask_feature = 0
    cliprange = 5.0
    count = 100.0                    # running count (> 1, so normalization runs)

    x = jax.random.normal(ks[0], (B, items, d_in), dtype=jnp.float32) * 3.0
    x = x.at[:, -2:, mask_feature].set(0.0)          # mark two item slots "empty"

    mean = jax.random.normal(ks[1], (d_in,), dtype=jnp.float32) * 0.5
    squares_sum = jnp.abs(jax.random.normal(ks[2], (d_in,), dtype=jnp.float32)) * count
    squares_sum = squares_sum.at[1].set(0.0)         # exercise stddev()==0 -> 1
    norm_state = {"mean": mean, "squares_sum": squares_sum, "count": count}

    params = {
        "w_emb": _linear_init(ks[3], d_in, (d_in, d_model)),
        "b_emb": _linear_init(ks[4], d_in, (1, d_model)),
        "ln1_w": jnp.ones((1, d_model), jnp.float32),
        "ln1_b": jnp.zeros((1, d_model), jnp.float32),
        "w_ff1": _linear_init(ks[5], d_model, (d_model, d_ff)),
        "b_ff1": _linear_init(ks[6], d_model, (1, d_ff)),
        "w_ff2": _linear_init(ks[7], d_ff, (d_ff, d_model)),
        "b_ff2": _linear_init(ks[8], d_ff, (1, d_model)),
        "ln2_w": jnp.ones((1, d_model), jnp.float32),
        "ln2_b": jnp.zeros((1, d_model), jnp.float32),
    }

    # --- InputNorm kernel: tight check (no matmuls involved) ---
    xn = jax.block_until_ready(
        input_norm_forward(x, mean, squares_sum, count, cliprange=cliprange))
    xn_ref = _reference_input_norm(x, mean, squares_sum, count, cliprange)
    assert jnp.allclose(xn, xn_ref, atol=1e-4, rtol=1e-4), "InputNorm mismatch"

    # --- full ItemBlock forward (origin=None path) ---
    y, relpos, mask = item_block_forward(x, norm_state, params,
                                         mask_feature=mask_feature,
                                         cliprange=cliprange)
    y = jax.block_until_ready(y)

    # over/underflow detection (mirrors the module's NaN/inf check)
    assert not bool(jnp.any(jnp.isnan(y)) | jnp.any(jnp.isinf(y))), \
        "OVER/UNDERFLOW DETECTED!"

    y_ref, _, mask_ref = _reference_item_block(x, norm_state, params,
                                               mask_feature, cliprange)
    assert bool(jnp.array_equal(mask, mask_ref)), "mask mismatch"
    # Looser tolerance: MXU f32 matmuls at default precision may differ slightly
    # between the Mosaic kernel and the XLA reference.
    assert jnp.allclose(y, y_ref, atol=2e-2, rtol=2e-2), "ItemBlock mismatch"

    print("KERNEL_OK")
</pallas_src>

<mosaic_0001>
module attributes {stable_mosaic.version = 11 : i64} {
  func.func @_input_norm_kernel(%arg0: i32, %arg1: memref<1xf32, #tpu.memory_space<smem>>, %arg2: memref<1x128xf32, #tpu.memory_space<vmem>>, %arg3: memref<1x128xf32, #tpu.memory_space<vmem>>, %arg4: memref<8x128xf32, #tpu.memory_space<vmem>>, %arg5: memref<8x128xf32, #tpu.memory_space<vmem>>) attributes {dimension_semantics = [#tpu.dimension_semantics<parallel>], iteration_bounds = array<i64: 1>, scalar_prefetch = 1 : i64, scratch_operands = 0 : i64, tpu.core_type = #tpu.core_type<tc>, window_params = [{pipeline_mode = #tpu.pipeline_mode<synchronous>, transform_indices = @transform_0, window_bounds = array<i64: 1, 128>}, {pipeline_mode = #tpu.pipeline_mode<synchronous>, transform_indices = @transform_1, window_bounds = array<i64: 1, 128>}, {transform_indices = @transform_2, window_bounds = array<i64: 8, 128>}, {transform_indices = @transform_3, window_bounds = array<i64: 8, 128>}]} {
    %c0 = arith.constant 0 : index
    %0 = memref.load %arg1[%c0] : memref<1xf32, #tpu.memory_space<smem>>
    %c0_0 = arith.constant 0 : index
    %c0_1 = arith.constant 0 : index
    %1 = vector.load %arg4[%c0_0, %c0_1] : memref<8x128xf32, #tpu.memory_space<vmem>>, vector<8x128xf32>
    %cst = arith.constant 1.000000e+00 : f32
    %2 = arith.subf %0, %cst : f32
    %cst_2 = arith.constant 1.000000e+00 : f32
    %3 = arith.maximumf %2, %cst_2 : f32
    %c0_3 = arith.constant 0 : index
    %c0_4 = arith.constant 0 : index
    %4 = vector.load %arg3[%c0_3, %c0_4] : memref<1x128xf32, #tpu.memory_space<vmem>>, vector<1x128xf32>
    %5 = vector.broadcast %3 : f32 to vector<1x128xf32>
    %6 = arith.divf %4, %5 : vector<1x128xf32>
    %7 = math.rsqrt %6 : vector<1x128xf32>
    %cst_5 = arith.constant 0.000000e+00 : f32
    %8 = vector.broadcast %cst_5 : f32 to vector<1x128xf32>
    %9 = arith.cmpf one, %6, %8 : vector<1x128xf32>
    %cst_6 = arith.constant 1.000000e+00 : f32
    %10 = vector.broadcast %cst_6 : f32 to vector<1x128xf32>
    %11 = arith.select %9, %7, %10 : vector<1x128xi1>, vector<1x128xf32>
    %cst_7 = arith.constant 1.000000e+00 : f32
    %12 = arith.cmpf ogt, %0, %cst_7 : f32
    %cst_8 = arith.constant 1.000000e+00 : f32
    %13 = vector.broadcast %cst_8 : f32 to vector<1x128xf32>
    %14 = arith.select %12, %11, %13 : vector<1x128xf32>
    %c0_9 = arith.constant 0 : index
    %c0_10 = arith.constant 0 : index
    %15 = vector.load %arg2[%c0_9, %c0_10] : memref<1x128xf32, #tpu.memory_space<vmem>>, vector<1x128xf32>
    %cst_11 = arith.constant 0.000000e+00 : f32
    %16 = vector.broadcast %cst_11 : f32 to vector<1x128xf32>
    %17 = arith.select %12, %15, %16 : vector<1x128xf32>
    %18 = vector.broadcast %17 : vector<1x128xf32> to vector<8x128xf32>
    %19 = arith.subf %1, %18 : vector<8x128xf32>
    %20 = vector.broadcast %14 : vector<1x128xf32> to vector<8x128xf32>
    %21 = arith.mulf %19, %20 : vector<8x128xf32>
    %cst_12 = arith.constant -5.000000e+00 : f32
    %cst_13 = arith.constant 5.000000e+00 : f32
    %22 = vector.broadcast %cst_12 : f32 to vector<8x128xf32>
    %23 = arith.maximumf %22, %21 : vector<8x128xf32>
    %24 = vector.broadcast %cst_13 : f32 to vector<8x128xf32>
    %25 = arith.minimumf %24, %23 : vector<8x128xf32>
    %c0_14 = arith.constant 0 : index
    %c0_15 = arith.constant 0 : index
    %26 = vector.load %arg5[%c0_14, %c0_15] : memref<8x128xf32, #tpu.memory_space<vmem>>, vector<8x128xf32>
    tpu.vector_store %arg5[%c0_14, %c0_15], %25 {strides = array<i32>} : memref<8x128xf32, #tpu.memory_space<vmem>>, vector<8x128xf32>,
    return
  }
  func.func @transform_0(%arg0: i32, %arg1: memref<1xf32, #tpu.memory_space<smem>>) -> (i32, i32) {
    %c0_i32 = arith.constant 0 : i32
    %c0_i32_0 = arith.constant 0 : i32
    %c0_i32_1 = arith.constant 0 : i32
    return %c0_i32, %c0_i32_0 : i32, i32
  }
  func.func @transform_1(%arg0: i32, %arg1: memref<1xf32, #tpu.memory_space<smem>>) -> (i32, i32) {
    %c0_i32 = arith.constant 0 : i32
    %c0_i32_0 = arith.constant 0 : i32
    %c0_i32_1 = arith.constant 0 : i32
    return %c0_i32, %c0_i32_0 : i32, i32
  }
  func.func @transform_2(%arg0: i32, %arg1: memref<1xf32, #tpu.memory_space<smem>>) -> (i32, i32) {
    %c0_i32 = arith.constant 0 : i32
    %c0_i32_0 = arith.constant 0 : i32
    return %arg0, %c0_i32 : i32, i32
  }
  func.func @transform_3(%arg0: i32, %arg1: memref<1xf32, #tpu.memory_space<smem>>) -> (i32, i32) {
    %c0_i32 = arith.constant 0 : i32
    %c0_i32_0 = arith.constant 0 : i32
    return %arg0, %c0_i32 : i32, i32
  }
}

</mosaic_0001>

<bundles_post_ra>
// kernel: tpu_custom_call.1
= control target key start
LH: loop header
LB: loop body
LE: loop exit
PB: predicated region body
PF: predicated region fallthrough
CT: control target
= control target key end

     0   :  { %10 = vsyncpa [#allocation5], 0  ;;  %s214_s0 = inlined_call_operand.<no memory space> [shape: f32[1], index: 0, kind: input, shape index: {}]   ;;  %s215_s1 = inlined_call_operand.vmem [shape: f32[1,128], index: 1, kind: input, shape index: {}]   ;;  %s216_s2 = inlined_call_operand.vmem [shape: f32[1,128], index: 2, kind: input, shape index: {}]   ;;  %s217_s3 = inlined_call_operand.hbm [shape: f32[8,128], index: 3, kind: input, shape index: {}]   ;;  %s218_s4 = inlined_call_operand.hbm [shape: f32[8,128], index: 4, kind: output, shape index: {}]  }
   0x1   :  { %11 = vsyncpa [#allocation6], 0  ;;  %s21_s17 = sshll.u32 %s217_s3, 4  ;;  %s160_s18 = smov [#allocation4]   ;;  %s22_s17 = int_to_ptr.hbm [resolvable:$true] %s21_s17 }
   0x2   :  { %s23_s19 = sshll.u32 %s160_s18, 4  ;;  %s24_s19 = int_to_ptr.vmem [resolvable:$true] %s23_s19 }
   0x3   :  { %26 = dma.hbm_to_vmem [thread:$0]  %s22_s17, 128, %s24_s19, [#allocation5]  }
   0x4   :  { %156 = dma.done.wait [#allocation5], 128  }
   0x5   :  { %157 = vsyncadd [#allocation5], 4294967168  ;;  %s99_s22 = sadd.f32 -1.0, %s214_s0  ;;  %s161_s23 = smov 1.0   ;;  %v35_v9 = vld [vmem:[%s216_s2] sm:$0x1] }
   0x6   :  { %p64_p0 = scmp.gt.f32.partialorder %s214_s0, 1.0  ;;  %v69_v17 = vld [vmem:[%s215_s1] sm:$0x1]  ;;  %s162_s0 = smov [#allocation7]  }
   0x7   :  { %s34_s24 = smax.f32 %s161_s23, %s99_s22  ;;  %v32_v23 = vld [vmem:[#allocation4] sm:$0xff]  ;;  %s87_s1 = sshll.u32 %s162_s0, 4  ;;  %s88_s1 = int_to_ptr.vmem [resolvable:$true] %s87_s1 }
   0x8   :  { %v36_v0 = vstv %s34_s24  ;;  %s65_s28 = scalar_select %p64_p0, 1, 0 }
   0x9   :  { %104 = vrcp.f32 %v36_v0  ;;  %v48_v3 = vand.u32 2147483648, %v36_v0  ;;  %vm42_vm0 = vweird.f32 %v36_v0  ;;  %v46_v5 = vand.u32 2147483647, %v36_v0  ;;  %s89_s6 = sshll.u32 %s218_s4, 4  ;;  %s90_s6 = int_to_ptr.hbm [resolvable:$true] %s89_s6 }
   0xa   :  { %v66_v13 = vstv %s65_s28 }
   0xb   :  { %v49_v7 = vor.u32 1.1754944e-38, %v48_v3  ;;  %vm47_vm3 = vcmp.eq.f32.partialorder %v46_v5, 8.507059e+37  ;;  %vm200_vm4 = vcmp.eq.s32.totalorder %v66_v13, 1 }
   0xc   :  { %v70_v20 = vsel %vm200_vm4, %v69_v17, 0.0 }
   0xd   :  { %v72_v22 = vperm.slane %v70_v20, 0 }
   0xf   :  { %v105_v1 = vpop.eup %104  ;;  %v74_v27 = vsub.f32 %v32_v23, %v72_v22 }
  0x10   :  { %v38_v2 = vmul.f32 %v105_v1, %v36_v0  ;;  %vm43_vm1 = vweird.f32 %v105_v1 }
  0x11   :  { %vm44_vm2 = vmor %vm42_vm0, %vm43_vm1 }
  0x12   :  { %v39_v4 = vsub.f32 1.0, %v38_v2 }
  0x14   :  { %v40_v6 = vmul.f32 %v105_v1, %v39_v4 }
  0x16   :  { %v41_v8 = vadd.f32 %v105_v1, %v40_v6 }
  0x18   :  { %v45_v10 = vsel %vm44_vm2, %v105_v1, %v41_v8 }
  0x19   :  { %v50_v11 = vsel %vm47_vm3, %v49_v7, %v45_v10 }
  0x1a   :  { %v51_v12 = vmul.f32 %v50_v11, %v35_v9 }
  0x1c   :  { %106 = vrsqrt.f32 %v51_v12  ;;  %vm58_vm5 = vweird.f32 %v51_v12  ;;  %vm62_vm8 = vcmp.ne.f32.partialorder %v51_v12, 0.0 }
  0x22   :  { %v107_v14 = vpop.eup %106 }
  0x23   :  { %v53_v15 = vmul.f32 %v107_v14, %v51_v12  ;;  %vm59_vm6 = vweird.f32 %v107_v14 }
  0x24   :  { %vm60_vm7 = vmor %vm58_vm5, %vm59_vm6 }
  0x25   :  { %v54_v18 = vmul.f32 %v107_v14, %v53_v15 }
  0x27   :  { %v55_v19 = vmul.f32 0.5, %v54_v18 }
  0x29   :  { %v56_v21 = vsub.f32 1.5, %v55_v19 }
  0x2b   :  { %v57_v24 = vmul.f32 %v107_v14, %v56_v21 }
  0x2d   :  { %v61_v25 = vsel %vm60_vm7, %v107_v14, %v57_v24 }
  0x2e   :  { %v63_v26 = vsel %vm62_vm8, %v61_v25, 1.0 }
  0x2f   :  { %v68_v28 = vsel %vm200_vm4, %v63_v26, 1.0 }
  0x30   :  { %v76_v29 = vperm.slane %v68_v28, 0 }
  0x32   :  { %v78_v30 = vmul.f32 %v76_v29, %v74_v27 }
  0x34   :  { %v100_v31 = vclamps-f32 %v78_v30, 5.0 }
  0x36   :  { %81 = vst [vmem:[#allocation7] sm:$0xff] %v100_v31 }
  0x37   :  { %92 = dma.vmem_to_hbm [thread:$0]  %s88_s1, 128, %s90_s6, [#allocation6]  }
  0x38   :  { %158 = dma.done.wait [#allocation6], 128  }
  0x39   :  { %159 = vsyncadd [#allocation6], 4294967168 }
  0x3a   :  { %97 = vsyncpa [#allocation5], 1 }
  0x3b   :  { %98 = vsyncpa [#allocation6], 1 }

</bundles_post_ra>
